<compile_context>
chip_gen: v7x
topology: tpu7x:2x2x1
jax: 0.10.0
libtpu: 0.0.40
codegen_flags: <defaults>
</compile_context>

<pallas_src>
import functools

import jax
import jax.numpy as jnp
from jax import lax
from jax.experimental import pallas as pl
from jax.experimental.pallas import tpu as pltpu


def _round_up(x, m):
    return ((x + m - 1) // m) * m


def _matmul_bias_kernel(a_ref, w_ref, b_ref, o_ref):
    # a_ref: (TM, K) bf16, w_ref: (K, Nb) bf16, b_ref: (1, Nb) f32,
    # o_ref: (TM, Nb) out_dtype.  MXU matmul with f32 accumulation.
    acc = jnp.dot(a_ref[...], w_ref[...], preferred_element_type=jnp.float32)
    o_ref[...] = (acc + b_ref[...]).astype(o_ref.dtype)


def _choose_tm(m, target=512):
    """Sublane-aligned M tile.

    - If M fits one target tile: single grid step (no forced split on the
      single-TC v5e/v6e; nothing to parallelize on v7x either).
    - Otherwise: at least 4 tiles so v7x's two TensorCores each run >= 2
      iterations and the A-tile prologue DMA / output epilogue are hidden.
      (On v5e/v6e the extra ~0.35us/step is negligible; callers can raise
      `target` to 1024 there if desired.)
    """
    if m <= target:
        return max(8, _round_up(m, 8))
    n_tiles = max(4, -(-m // target))
    return max(8, _round_up(-(-m // n_tiles), 8))


def _vmem_limit_bytes(needed):
    """Request enough VMEM for the pipeline, but never the whole core."""
    try:
        cap = int(pltpu.get_tpu_info().vmem_capacity_bytes)
    except Exception:  # pragma: no cover - conservative fallback (v7x-sized)
        cap = 64 << 20
    return int(min(max(needed + (4 << 20), 16 << 20), cap * 3 // 4))


def _pallas_projection(patches, w_flat, bias, *, out_dtype, tm_target=512):
    """patches: (M, K) bf16, w_flat: (K, N), bias: (N,) -> (M, N) out_dtype."""
    M, K = patches.shape
    N = w_flat.shape[1]

    tm = _choose_tm(M, tm_target)
    grid_m = -(-M // tm)
    Mp = grid_m * tm

    # Lane-dense output stores only when that does not blow up the output
    # write (and the post-slice pass) for tiny embed dims.
    Np = _round_up(N, 128) if (N >= 128 and N % 128) else N

    a = patches if patches.dtype == jnp.bfloat16 else patches.astype(jnp.bfloat16)
    if Mp != M:
        a = jnp.pad(a, ((0, Mp - M), (0, 0)))
    w = w_flat.astype(jnp.bfloat16)
    b = bias.astype(jnp.float32)
    if Np != N:
        w = jnp.pad(w, ((0, 0), (0, Np - N)))
        b = jnp.pad(b, (0, Np - N))
    b = b.reshape(1, Np)

    out_itemsize = jnp.dtype(out_dtype).itemsize
    cost = pl.CostEstimate(
        flops=2 * Mp * K * Np,
        transcendentals=0,
        bytes_accessed=(Mp * K * 2 + K * Np * 2 + Np * 4
                        + Mp * Np * out_itemsize),
    )
    # VMEM: A tile (x2 buffers, bf16) + W + bias (single-buffered)
    #       + out tile (x2 buffers).
    needed = (2 * tm * K * 2
              + K * Np * 2 + Np * 4
              + 2 * tm * Np * out_itemsize)
    vmem_limit = _vmem_limit_bytes(needed)

    out = pl.pallas_call(
        _matmul_bias_kernel,
        out_shape=jax.ShapeDtypeStruct((Mp, Np), out_dtype),
        grid_spec=pltpu.PrefetchScalarGridSpec(
            num_scalar_prefetch=0,
            grid=(grid_m,),
            in_specs=[
                # Streamed A tile: full (unpadded) K as the block's minor dim.
                pl.BlockSpec((tm, K), lambda i: (i, 0)),
                # Weight / bias: fetched once, revisited -> single buffer.
                pl.BlockSpec((K, Np), lambda i: (0, 0),
                             pipeline_mode=pl.Buffered(1)),
                pl.BlockSpec((1, Np), lambda i: (0, 0),
                             pipeline_mode=pl.Buffered(1)),
            ],
            out_specs=pl.BlockSpec((tm, Np), lambda i: (i, 0)),
        ),
        compiler_params=pltpu.CompilerParams(
            dimension_semantics=("parallel",),
            vmem_limit_bytes=vmem_limit,
            allow_input_fusion=[True, True, True]),
        cost_estimate=cost,
    )(a, w, b)

    if Mp != M or Np != N:
        out = out[:M, :N]
    return out


def patch_embed_forward(x, weight, bias, *, kernel_size, stride, padding,
                        out_dtype=None, tm_target=512):
    """
    x:      (B, C, D, H, W)          (PyTorch NCDHW)
    weight: (O, C, kD, kH, kW)
    bias:   (O,)
    returns (B, OD, OH, OW, O)  ==  torch: proj(x).permute(0, 2, 3, 4, 1)

    Numerics note: operands are streamed to the MXU in bf16 with f32
    accumulation (intentional ~1e-3-level deviation from an f32 Conv3d).
    out_dtype defaults to x.dtype; pass jnp.bfloat16 to halve the output write.
    """
    B, C, D, H, W = x.shape
    O = weight.shape[0]
    kD, kH, kW = kernel_size
    sD, sH, sW = stride
    pD, pH, pW = padding

    OD = (D + 2 * pD - kD) // sD + 1
    OH = (H + 2 * pH - kH) // sH + 1
    OW = (W + 2 * pW - kW) // sW + 1
    K = C * kD * kH * kW

    # Cast BEFORE the im2col so the expanded patches matrix in HBM is bf16.
    x_bf16 = x.astype(jnp.bfloat16)

    # XLA patch extractor: output features ordered (c, kd, kh, kw), which
    # matches weight.reshape(O, -1); NDHWC out spec puts features last, so the
    # reshape to (M, K) below is free (no transpose / no 343-way concat).
    patches = lax.conv_general_dilated_patches(
        x_bf16,
        filter_shape=(kD, kH, kW),
        window_strides=(sD, sH, sW),
        padding=[(pD, pD), (pH, pH), (pW, pW)],
        dimension_numbers=("NCDHW", "DHWIO", "NDHWC"))
    patches = patches.reshape(B * OD * OH * OW, K)

    # PyTorch weight (O, C, kD, kH, kW) -> (K, O); flatten order matches.
    w_flat = weight.reshape(O, K).T

    if out_dtype is None:
        out_dtype = x.dtype
    out = _pallas_projection(patches, w_flat, bias,
                             out_dtype=out_dtype, tm_target=tm_target)
    return out.reshape(B, OD, OH, OW, O)


def _reference_forward(x, weight, bias, *, kernel_size, stride, padding):
    """Pure-JAX reference using lax.conv_general_dilated (NCDHW/OIDHW)."""
    pads = [(p, p) for p in padding]
    y = lax.conv_general_dilated(
        x, weight, window_strides=stride, padding=pads,
        dimension_numbers=("NCDHW", "OIDHW", "NCDHW"))
    y = y + bias.reshape(1, -1, 1, 1, 1)
    return jnp.transpose(y, (0, 2, 3, 4, 1))


if __name__ == "__main__":
    # Small deterministic example consistent with the module:
    # kernel_size=(7,7,7), stride=(4,4,4), padding=(3,3,3), in_chans=1,
    # embed_dim kept small (32) for a quick run.
    kernel_size = (7, 7, 7)
    stride = (4, 4, 4)
    padding = (3, 3, 3)
    in_chans = 1
    embed_dim = 32

    B, D, H, W = 2, 16, 16, 16

    key = jax.random.PRNGKey(0)
    kx, kw_, kb = jax.random.split(key, 3)
    x = jax.random.normal(kx, (B, in_chans, D, H, W), dtype=jnp.float32)
    fan_in = in_chans * kernel_size[0] * kernel_size[1] * kernel_size[2]
    w_scale = 1.0 / (fan_in ** 0.5)
    weight = jax.random.uniform(
        kw_, (embed_dim, in_chans) + kernel_size,
        minval=-w_scale, maxval=w_scale, dtype=jnp.float32)
    bias = jax.random.uniform(
        kb, (embed_dim,), minval=-w_scale, maxval=w_scale, dtype=jnp.float32)

    fwd = functools.partial(
        patch_embed_forward,
        kernel_size=kernel_size, stride=stride, padding=padding)
    out = jax.block_until_ready(jax.jit(fwd)(x, weight, bias))

    # Also exercise the multi-step pipelined grid path (4 M tiles).
    fwd_tiled = functools.partial(
        patch_embed_forward,
        kernel_size=kernel_size, stride=stride, padding=padding, tm_target=32)
    out_tiled = jax.block_until_ready(jax.jit(fwd_tiled)(x, weight, bias))

    # Reference on bf16-quantized inputs (the kernel streams bf16 operands and
    # accumulates in f32), so only accumulation-order differences remain.
    xq = x.astype(jnp.bfloat16).astype(jnp.float32)
    wq = weight.astype(jnp.bfloat16).astype(jnp.float32)
    ref = jax.block_until_ready(_reference_forward(
        xq, wq, bias,
        kernel_size=kernel_size, stride=stride, padding=padding))

    assert out.shape == (B, 4, 4, 4, embed_dim), out.shape
    assert jnp.allclose(out, ref, atol=2e-3, rtol=2e-3), \
        float(jnp.max(jnp.abs(out - ref)))
    assert jnp.allclose(out_tiled, ref, atol=2e-3, rtol=2e-3), \
        float(jnp.max(jnp.abs(out_tiled - ref)))

    print("KERNEL_OK")
</pallas_src>

<mosaic_0001>
module attributes {stable_mosaic.version = 11 : i64} {
  func.func @_matmul_bias_kernel(%arg0: i32, %arg1: memref<128x343xbf16, #tpu.memory_space<vmem>>, %arg2: memref<343x32xbf16, #tpu.memory_space<vmem>>, %arg3: memref<1x32xf32, #tpu.memory_space<vmem>>, %arg4: memref<128x32xf32, #tpu.memory_space<vmem>>) attributes {dimension_semantics = [#tpu.dimension_semantics<parallel>], iteration_bounds = array<i64: 1>, scalar_prefetch = 0 : i64, scratch_operands = 0 : i64, tpu.core_type = #tpu.core_type<tc>, window_params = [{transform_indices = @transform_0, window_bounds = array<i64: 128, 343>}, {pipeline_mode = #tpu.pipeline_mode<synchronous>, transform_indices = @transform_1, window_bounds = array<i64: 343, 32>}, {pipeline_mode = #tpu.pipeline_mode<synchronous>, transform_indices = @transform_2, window_bounds = array<i64: 1, 32>}, {transform_indices = @transform_3, window_bounds = array<i64: 128, 32>}]} {
    %c0 = arith.constant 0 : index
    %c0_0 = arith.constant 0 : index
    %0 = vector.load %arg1[%c0, %c0_0] : memref<128x343xbf16, #tpu.memory_space<vmem>>, vector<128x343xbf16>
    %c0_1 = arith.constant 0 : index
    %c0_2 = arith.constant 0 : index
    %1 = vector.load %arg2[%c0_1, %c0_2] : memref<343x32xbf16, #tpu.memory_space<vmem>>, vector<343x32xbf16>
    %cst = arith.constant dense<0.000000e+00> : vector<128x32xf32>
    %2 = tpu.matmul %0, %1, %cst {dimension_numbers = #tpu.dot_dimension_numbers<[1], [0], [0], [1], [0, 0, 1, 1], [], []>} : vector<128x343xbf16>, vector<343x32xbf16>, vector<128x32xf32> -> vector<128x32xf32>
    %c0_3 = arith.constant 0 : index
    %c0_4 = arith.constant 0 : index
    %3 = vector.load %arg3[%c0_3, %c0_4] : memref<1x32xf32, #tpu.memory_space<vmem>>, vector<1x32xf32>
    %4 = vector.broadcast %3 : vector<1x32xf32> to vector<128x32xf32>
    %5 = arith.addf %2, %4 : vector<128x32xf32>
    %c0_5 = arith.constant 0 : index
    %c0_6 = arith.constant 0 : index
    %6 = vector.load %arg4[%c0_5, %c0_6] : memref<128x32xf32, #tpu.memory_space<vmem>>, vector<128x32xf32>
    tpu.vector_store %arg4[%c0_5, %c0_6], %5 {strides = array<i32>} : memref<128x32xf32, #tpu.memory_space<vmem>>, vector<128x32xf32>,
    return
  }
  func.func @transform_0(%arg0: i32) -> (i32, i32) {
    %c0_i32 = arith.constant 0 : i32
    %c0_i32_0 = arith.constant 0 : i32
    return %arg0, %c0_i32 : i32, i32
  }
  func.func @transform_1(%arg0: i32) -> (i32, i32) {
    %c0_i32 = arith.constant 0 : i32
    %c0_i32_0 = arith.constant 0 : i32
    %c0_i32_1 = arith.constant 0 : i32
    return %c0_i32, %c0_i32_0 : i32, i32
  }
  func.func @transform_2(%arg0: i32) -> (i32, i32) {
    %c0_i32 = arith.constant 0 : i32
    %c0_i32_0 = arith.constant 0 : i32
    %c0_i32_1 = arith.constant 0 : i32
    return %c0_i32, %c0_i32_0 : i32, i32
  }
  func.func @transform_3(%arg0: i32) -> (i32, i32) {
    %c0_i32 = arith.constant 0 : i32
    %c0_i32_0 = arith.constant 0 : i32
    return %arg0, %c0_i32 : i32, i32
  }
}

</mosaic_0001>

<bundles_post_ra>
// kernel: patch_embed_forward.2
= control target key start
LH: loop header
LB: loop body
LE: loop exit
PB: predicated region body
PF: predicated region fallthrough
CT: control target
= control target key end

     0   :  { %vm692_vm0 = vcmask 711680   ;;  %vm717_vm1 = vcmask 1042432   ;;  %vm718_vm2 = vcmask 1043456   ;;  %v1376_v42 = vmov 65535   ;;  %s1595_s0 = inlined_call_operand.vmem [shape: bf16[128,343], index: 0, kind: input, shape index: {}]   ;;  %s1596_s1 = inlined_call_operand.vmem [shape: bf16[32,343], index: 1, kind: input, shape index: {}]   ;;  %s1597_s2 = inlined_call_operand.vmem [shape: f32[32], index: 2, kind: input, shape index: {}]   ;;  %s1598_s3 = inlined_call_operand.hbm [shape: f32[128,32], index: 3, kind: output, shape index: {}]  }
   0x1   :  { %v1278_v0 = vld [vmem:[%s1596_s1 + $0x40] sm:$0xff]   ;;  %v1281_v2 = vld [vmem:[%s1596_s1 + $0x48] sm:$0xff]   ;;  %v1285_v4 = vld [vmem:[%s1596_s1 + $0x50] sm:$0xff]   ;;  %v719_v43 = vsel %vm717_vm1, 4294967295, %v1376_v42 }
   0x2   :  { %v15_v1 = vld [vmem:[%s1596_s1] sm:$0xff]   ;;  %1087 = vst [vmem:[#allocation4 + $0x40] sm:$0xff] %v1278_v0   ;;  %v1283_v3 = vld [vmem:[%s1596_s1 + $0x8] sm:$0xff]   ;;  %1092 = vst [vmem:[#allocation4 + $0x48] sm:$0xff] %v1281_v2   ;;  %v720_v48 = vsel %vm718_vm2, %v719_v43, 0 }
   0x3   :  { %20 = vst [vmem:[#allocation4] sm:$0xff] %v15_v1   ;;  %1052 = vst [vmem:[#allocation4 + $0x8] sm:$0xff] %v1283_v3   ;;  %v1287_v5 = vld [vmem:[%s1596_s1 + $0x10] sm:$0xff]   ;;  %v1289_v6 = vld [vmem:[%s1596_s1 + $0x58] sm:$0xff]  }
   0x4   :  { %1097 = vst [vmem:[#allocation4 + $0x50] sm:$0xff] %v1285_v4   ;;  %1057 = vst [vmem:[#allocation4 + $0x10] sm:$0xff] %v1287_v5   ;;  %v1291_v7 = vld [vmem:[%s1596_s1 + $0x80] sm:$0xff]   ;;  %v1293_v8 = vld [vmem:[%s1596_s1 + $0x18] sm:$0xff]  }
   0x5   :  { %1102 = vst [vmem:[#allocation4 + $0x58] sm:$0xff] %v1289_v6   ;;  %1127 = vst [vmem:[#allocation4 + $0x80] sm:$0xff] %v1291_v7   ;;  %v1295_v18 = vld [vmem:[%s1596_s1 + $0x60] sm:$0xff]   ;;  %v1297_v19 = vld [vmem:[%s1596_s1 + $0x88] sm:$0xff]  }
   0x6   :  { %1062 = vst [vmem:[#allocation4 + $0x18] sm:$0xff] %v1293_v8   ;;  %1107 = vst [vmem:[#allocation4 + $0x60] sm:$0xff] %v1295_v18   ;;  %v1299_v20 = vld [vmem:[%s1596_s1 + $0x20] sm:$0xff]   ;;  %v1301_v21 = vld [vmem:[%s1596_s1 + $0x68] sm:$0xff]  }
   0x7   :  { %1132 = vst [vmem:[#allocation4 + $0x88] sm:$0xff] %v1297_v19   ;;  %1067 = vst [vmem:[#allocation4 + $0x20] sm:$0xff] %v1299_v20   ;;  %v1303_v22 = vld [vmem:[%s1596_s1 + $0x90] sm:$0xff]   ;;  %v1305_v23 = vld [vmem:[%s1596_s1 + $0x28] sm:$0xff]  }
   0x8   :  { %1112 = vst [vmem:[#allocation4 + $0x68] sm:$0xff] %v1301_v21   ;;  %1137 = vst [vmem:[#allocation4 + $0x90] sm:$0xff] %v1303_v22   ;;  %v1307_v24 = vld [vmem:[%s1596_s1 + $0x70] sm:$0xff]   ;;  %v1309_v25 = vld [vmem:[%s1596_s1 + $0x98] sm:$0xff]  }
   0x9   :  { %v1279_v9 = vld [vmem:[#allocation4 + $0x40] sm:$0xff]   ;;  %v1282_v11 = vld [vmem:[#allocation4 + $0x48] sm:$0xff]   ;;  %1072 = vst [vmem:[#allocation4 + $0x28] sm:$0xff] %v1305_v23   ;;  %1117 = vst [vmem:[#allocation4 + $0x70] sm:$0xff] %v1307_v24  }
   0xa   :  { %v1280_v10 = vld [vmem:[#allocation4] sm:$0xff]   ;;  %1168 = vmatprep.subr.bf16.mxu0 %v1279_v9  ;;  %v1284_v12 = vld [vmem:[#allocation4 + $0x8] sm:$0xff]   ;;  %v1311_v26 = vld [vmem:[%s1596_s1 + $0x30] sm:$0xff]   ;;  %1142 = vst [vmem:[#allocation4 + $0x98] sm:$0xff] %v1309_v25  }
   0xb   :  { %1169 = vmatpush3.bf16.msra.mxu0 %v1280_v10  ;;  %v1286_v13 = vld [vmem:[#allocation4 + $0x50] sm:$0xff]   ;;  %1077 = vst [vmem:[#allocation4 + $0x30] sm:$0xff] %v1311_v26   ;;  %v1313_v36 = vld [vmem:[%s1596_s1 + $0x78] sm:$0xff]   ;;  %v1315_v37 = vld [vmem:[%s1596_s1 + $0xa0] sm:$0xff]  }
   0xc   :  { %1170 = vmatprep.subr.bf16.mxu0 %v1282_v11  ;;  %v1288_v14 = vld [vmem:[#allocation4 + $0x10] sm:$0xff]   ;;  %v1292_v15 = vld [vmem:[#allocation4 + $0x80] sm:$0xff]   ;;  %v1290_v16 = vld [vmem:[#allocation4 + $0x58] sm:$0xff]   ;;  %1122 = vst [vmem:[#allocation4 + $0x78] sm:$0xff] %v1313_v36  }
   0xd   :  { %1246 = vmatprep.subr.bf16.mxu1 %v1292_v15  ;;  %v1294_v17 = vld [vmem:[#allocation4 + $0x18] sm:$0xff]   ;;  %v1296_v27 = vld [vmem:[#allocation4 + $0x60] sm:$0xff]   ;;  %1147 = vst [vmem:[#allocation4 + $0xa0] sm:$0xff] %v1315_v37   ;;  %v992_v40 = vld [vmem:[%s1596_s1 + $0xa8] sm:$0xf] }
   0xe   :  { %1247 = vmatpush3.bf16.msra.mxu1 %v1292_v15  ;;  %v1298_v28 = vld [vmem:[#allocation4 + $0x88] sm:$0xff]   ;;  %v1300_v29 = vld [vmem:[#allocation4 + $0x20] sm:$0xff]   ;;  %v1317_v38 = vld [vmem:[%s1596_s1 + $0x38] sm:$0xff]   ;;  %356 = vst [vmem:[#allocation4 + $0xa8] sm:$0xf] %v992_v40 }
   0xf   :  { %1171 = vmatpush3.bf16.msra.mxu0 %v1284_v12  ;;  %1248 = vmatprep.subr.bf16.mxu1 %v1298_v28  ;;  %v1302_v30 = vld [vmem:[#allocation4 + $0x68] sm:$0xff]   ;;  %v1304_v31 = vld [vmem:[#allocation4 + $0x90] sm:$0xff]   ;;  %1082 = vst [vmem:[#allocation4 + $0x38] sm:$0xff] %v1317_v38   ;;  %v1331_v53 = vld [vmem:[%s1595_s0 + $0x38] ss:$12 sps:$4 sm:$0xff]  }
  0x10   :  { %1172 = vmatprep.subr.bf16.mxu0 %v1286_v13  ;;  %v1306_v32 = vld [vmem:[#allocation4 + $0x28] sm:$0xff]   ;;  %v1308_v33 = vld [vmem:[#allocation4 + $0x70] sm:$0xff]   ;;  %v1327_v54 = vld [vmem:[%s1595_s0 + $0x18] ss:$12 sps:$4 sm:$0xff]  }
  0x11   :  { %v1310_v34 = vld [vmem:[#allocation4 + $0x98] sm:$0xff]   ;;  %v1321_v39 = vld [vmem:[%s1595_s0 + $0x4] ss:$12 sps:$4 sm:$0xff]   ;;  %v1323_v41 = vld [vmem:[%s1595_s0 + $0x8] ss:$12 sps:$4 sm:$0xff]  }
  0x12   :  { %1249 = vmatpush3.bf16.msra.mxu1 %v1298_v28  ;;  %v1312_v35 = vld [vmem:[#allocation4 + $0x30] sm:$0xff]   ;;  %756 = vmatprep.mubr.bf16.mxu0 %v1321_v39  ;;  %v1319_v46 = vld [vmem:[%s1595_s0] ss:$12 sps:$4 sm:$0xff]   ;;  %v1325_v50 = vld [vmem:[%s1595_s0 + $0x1c] ss:$12 sps:$4 sm:$0xff]  }
  0x13   :  { %1173 = vmatpush3.bf16.msra.mxu0 %v1288_v14  ;;  %1250 = vmatprep.subr.bf16.mxu1 %v1304_v31  ;;  %v1314_v44 = vld [vmem:[#allocation4 + $0x78] sm:$0xff]   ;;  %v1324_v52 = vld [vmem:[%s1595_s0 + $0x20] ss:$12 sps:$4 sm:$0xff]   ;;  %v1339_v57 = vld [vmem:[%s1595_s0 + $0x68] ss:$12 sps:$4 sm:$0xff]  }
  0x14   :  { %1174 = vmatprep.subr.bf16.mxu0 %v1290_v16  ;;  %1258 = vmatprep.mubr.msk.bf16.mxu1 %vm692_vm0, %v1323_v41  ;;  %v1316_v45 = vld [vmem:[#allocation4 + $0xa0] sm:$0xff]   ;;  %v1332_v56 = vld [vmem:[%s1595_s0 + $0x50] ss:$12 sps:$4 sm:$0xff]  }
  0x15   :  { %v1322_v49 = vld [vmem:[#allocation4 + $0xa8] ss:$0 sps:$4 sm:$0xff]   ;;  %v1328_v55 = vld [vmem:[%s1595_s0 + $0x34] ss:$12 sps:$4 sm:$0xff]  }
  0x16   :  { %1251 = vmatpush3.bf16.msra.mxu1 %v1304_v31  ;;  %v1318_v47 = vld [vmem:[#allocation4 + $0x38] sm:$0xff]   ;;  %v722_v51 = vand.u32 %v1322_v49, %v720_v48 }
  0x17   :  { %1175 = vmatpush3.bf16.msra.mxu0 %v1294_v17  ;;  %1252 = vmatprep.subr.bf16.mxu1 %v1310_v34 }
  0x18   :  { %1176 = vmatprep.subr.bf16.mxu0 %v1296_v27 }
  0x1a   :  { %1253 = vmatpush3.bf16.msra.mxu1 %v1310_v34 }
  0x1b   :  { %1177 = vmatpush3.bf16.msra.mxu0 %v1300_v29  ;;  %1254 = vmatprep.subr.bf16.mxu1 %v1316_v45 }
  0x1c   :  { %1178 = vmatprep.subr.bf16.mxu0 %v1302_v30 }
  0x1e   :  { %1255 = vmatpush3.bf16.msra.mxu1 %v1316_v45 }
  0x1f   :  { %1179 = vmatpush3.bf16.msra.mxu0 %v1306_v32  ;;  %1256 = vmatprep.subr.bf16.mxu1 %v722_v51 }
  0x20   :  { %1180 = vmatprep.subr.bf16.mxu0 %v1308_v33 }
  0x22   :  { %1257 = vmatpush3.bf16.msra.mxu1 %v722_v51 }
  0x23   :  { %1181 = vmatpush3.bf16.msra.mxu0 %v1312_v35 }
  0x24   :  { %1182 = vmatprep.subr.bf16.mxu0 %v1314_v44 }
  0x25   :  { %1259 = vmatmul.mubr.msk.bf16.vlgmr.msra.gmra.mrb[0].mxu1 %vm692_vm0, %v1324_v52 }
  0x26   :  { %1262 = vmatprep.mubr.msk.bf16.mxu1 %vm692_vm0, %v1331_v53 }
  0x27   :  { %1183 = vmatpush3.bf16.msra.mxu0 %v1318_v47 }
  0x2a   :  { %757 = vmatmul.mubr.bf16.vlgmr.msra.gmra.mrb[0].mxu0 %v1319_v46 }
  0x2b   :  { %764 = vmatprep.mubr.bf16.mxu0 %v1325_v50 }
  0x32   :  { %765 = vmatmul.mubr.bf16.gmra.mrb[4].mxu0 %v1327_v54 }
  0x33   :  { %772 = vmatprep.mubr.bf16.mxu0 %v1328_v55 }
  0x34   :  { %8 = vsyncpa [#allocation3], 0  ;;  %v1330_v58 = vld [vmem:[%s1595_s0 + $0x30] ss:$12 sps:$4 sm:$0xff]   ;;  %1263 = vmatmul.mubr.msk.bf16.gmra.mrb[4].mxu1 %vm692_vm0, %v1332_v56  ;;  %v1333_v59 = vld [vmem:[%s1595_s0 + $0x4c] ss:$12 sps:$4 sm:$0xff]  }
  0x35   :  { %1266 = vmatprep.mubr.msk.bf16.mxu1 %vm692_vm0, %v1339_v57  ;;  %v1340_v60 = vld [vmem:[%s1595_s0 + $0x80] ss:$12 sps:$4 sm:$0xff]   ;;  %v1347_v61 = vld [vmem:[%s1595_s0 + $0x98] ss:$12 sps:$4 sm:$0xff]   ;;  %v1335_v62 = vld [vmem:[%s1595_s0 + $0x48] ss:$12 sps:$4 sm:$0xff]  }
  0x36   :  { %v1336_v63 = vld [vmem:[%s1595_s0 + $0x64] ss:$12 sps:$4 sm:$0xff]   ;;  %v1338_v1 = vld [vmem:[%s1595_s0 + $0x60] ss:$12 sps:$4 sm:$0xff]   ;;  %v1341_v2 = vld [vmem:[%s1595_s0 + $0x7c] ss:$12 sps:$4 sm:$0xff]  }
  0x37   :  { %v1348_v0 = vld [vmem:[%s1595_s0 + $0xb0] ss:$12 sps:$4 sm:$0xff]   ;;  %v1343_v3 = vld [vmem:[%s1595_s0 + $0x78] ss:$12 sps:$4 sm:$0xff]   ;;  %v1344_v4 = vld [vmem:[%s1595_s0 + $0x94] ss:$12 sps:$4 sm:$0xff]  }
  0x38   :  { %v1346_v5 = vld [vmem:[%s1595_s0 + $0x90] ss:$12 sps:$4 sm:$0xff]   ;;  %v1349_v6 = vld [vmem:[%s1595_s0 + $0xac] ss:$12 sps:$4 sm:$0xff]   ;;  %v1351_v7 = vld [vmem:[%s1595_s0 + $0xa8] ss:$12 sps:$4 sm:$0xff]  }
  0x39   :  { %v357_v8 = vld [vmem:[%s1597_s2] sm:$0x1]  ;;  %vm918_vm3 = vcmask 261120   ;;  %s1377_s0 = smov [#allocation2]  }
  0x3a   :  { %773 = vmatmul.mubr.bf16.gmra.mrb[8].mxu0 %v1330_v58  ;;  %359 = vst [vmem:[#allocation5] sm:$0x1] %v357_v8  ;;  %s940_s2 = sshll.u32 %s1377_s0, 4  ;;  %s941_s2 = int_to_ptr.vmem [resolvable:$true] %s940_s2 }
  0x3b   :  { %780 = vmatprep.mubr.bf16.mxu0 %v1333_v59  ;;  %s1352_s23 = scalar_lea.vmem %s941_s2, 2048  ;;  %p1357_p1 = scmp.lt.s32.totalorder %s941_s2, %s941_s2 }
  0x3c   :  { %1267 = vmatmul.mubr.msk.bf16.gmra.mrb[8].mxu1 %vm692_vm0, %v1340_v60  ;;  %p1353_p0 = scmp.ne.s32.totalorder %s941_s2, %s1352_s23  ;;  %p1358_p2 = scmp.lt.s32.totalorder %s1352_s23, %s1352_s23 }
  0x3d   :  { %1270 = vmatprep.mubr.msk.bf16.mxu1 %vm692_vm0, %v1347_v61 }
  0x3e   :  { %p1359_p3 = por %p1358_p2, %p1357_p1 }
  0x40   :  { %p1360_p4 = pnand %p1359_p3, %p1353_p0 }
  0x41   :  { %v1549_v11 = vld [vmem:[#allocation5] ss:$0 sm:$0xff] }
  0x42   :  { %781 = vmatmul.mubr.bf16.gmra.mrb[12].mxu0 %v1335_v62 }
  0x43   :  { %788 = vmatprep.mubr.bf16.mxu0 %v1336_v63 }
  0x44   :  { %1271 = vmatmul.mubr.msk.bf16.gmra.mrb[12].mxu1 %vm692_vm0, %v1348_v0 }
  0x4a   :  { %789 = vmatmul.mubr.bf16.gmra.mrb[16].mxu0 %v1338_v1 }
  0x4b   :  { %796 = vmatprep.mubr.bf16.mxu0 %v1341_v2 }
  0x52   :  { %797 = vmatmul.mubr.bf16.gmra.mrb[20].mxu0 %v1343_v3 }
  0x53   :  { %804 = vmatprep.mubr.bf16.mxu0 %v1344_v4 }
  0x5a   :  { %805 = vmatmul.mubr.bf16.gmra.mrb[24].mxu0 %v1346_v5 }
  0x5b   :  { %812 = vmatprep.mubr.bf16.mxu0 %v1349_v6 }
  0x62   :  { %813 = vmatmul.mubr.bf16.gmra.mrb[28].mxu0 %v1351_v7 }
  0xf8   :  { %v1260_v16 = vpop.f32.mrb[0].mxu1 }
  0xf9   :  { %v855_v18 = vpop.f32.mrb[1].mxu1 }
  0xfa   :  { %v1261_v20 = vpop.f32.mrb[2].mxu1 }
  0xfb   :  { %v858_v22 = vpop.f32.mrb[3].mxu1 }
  0xfd   :  { %v1184_v9 = vpop.f32.mrb[0].mxu0 }
  0xfe   :  { %v1185_v10 = vpop.f32.mrb[1].mxu0 }
  0xff   :  { %v1186_v12 = vadd.f32 %v1185_v10, %v1184_v9  ;;  %v1187_v13 = vpop.f32.mrb[2].mxu0 }
 0x100   :  { %v1188_v14 = vpop.f32.mrb[3].mxu0 }
 0x101   :  { %v1189_v15 = vadd.f32 %v1188_v14, %v1187_v13  ;;  %v759_v17 = vadd.f32 %v1186_v12, %v1549_v11 }
 0x103   :  { %v856_v19 = vadd.f32 %v855_v18, %v759_v17  ;;  %v762_v21 = vadd.f32 %v1189_v15, %v1549_v11 }
 0x105   :  { %919 = vst.msk [vmem:[#allocation2] sm:$0xff] %vm918_vm3, %v856_v19  ;;  %v859_v23 = vadd.f32 %v858_v22, %v762_v21  ;;  %v1190_v24 = vpop.f32.mrb[4].mxu0 }
 0x106   :  { %v1191_v25 = vpop.f32.mrb[5].mxu0 }
 0x107   :  { %920 = vst.msk [vmem:[#allocation2 + $0x8] sm:$0xff] %vm918_vm3, %v859_v23  ;;  %v1192_v26 = vadd.f32 %v1191_v25, %v1190_v24  ;;  %v1193_v27 = vpop.f32.mrb[6].mxu0  ;;  %v1264_v31 = vpop.f32.mrb[4].mxu1 }
 0x108   :  { %v1194_v28 = vpop.f32.mrb[7].mxu0  ;;  %v871_v32 = vpop.f32.mrb[5].mxu1 }
 0x109   :  { %v767_v29 = vadd.f32 %v1192_v26, %v1549_v11  ;;  %v1195_v30 = vadd.f32 %v1194_v28, %v1193_v27  ;;  %v1265_v35 = vpop.f32.mrb[6].mxu1 }
 0x10a   :  { %v874_v36 = vpop.f32.mrb[7].mxu1 }
 0x10b   :  { %v864_v33 = vadd.f32 %v1260_v16, %v767_v29  ;;  %v770_v34 = vadd.f32 %v1195_v30, %v1549_v11 }
 0x10d   :  { %921 = vst.msk [vmem:[#allocation2 + $0x10] sm:$0xff] %vm918_vm3, %v864_v33  ;;  %v867_v37 = vadd.f32 %v1261_v20, %v770_v34  ;;  %v1196_v38 = vpop.f32.mrb[8].mxu0 }
 0x10e   :  { %v1197_v39 = vpop.f32.mrb[9].mxu0 }
 0x10f   :  { %922 = vst.msk [vmem:[#allocation2 + $0x18] sm:$0xff] %vm918_vm3, %v867_v37  ;;  %v1198_v40 = vadd.f32 %v1197_v39, %v1196_v38  ;;  %v1199_v41 = vpop.f32.mrb[10].mxu0  ;;  %v1268_v45 = vpop.f32.mrb[8].mxu1 }
 0x110   :  { %v1200_v42 = vpop.f32.mrb[11].mxu0  ;;  %v887_v46 = vpop.f32.mrb[9].mxu1 }
 0x111   :  { %v1201_v43 = vadd.f32 %v1200_v42, %v1199_v41  ;;  %v775_v44 = vadd.f32 %v1198_v40, %v1549_v11  ;;  %v1269_v49 = vpop.f32.mrb[10].mxu1 }
 0x112   :  { %v890_v50 = vpop.f32.mrb[11].mxu1 }
 0x113   :  { %v872_v47 = vadd.f32 %v871_v32, %v775_v44  ;;  %v778_v48 = vadd.f32 %v1201_v43, %v1549_v11 }
 0x115   :  { %923 = vst.msk [vmem:[#allocation2 + $0x20] sm:$0xff] %vm918_vm3, %v872_v47  ;;  %v875_v51 = vadd.f32 %v874_v36, %v778_v48  ;;  %v1202_v52 = vpop.f32.mrb[12].mxu0 }
 0x116   :  { %v1203_v53 = vpop.f32.mrb[13].mxu0 }
 0x117   :  { %924 = vst.msk [vmem:[#allocation2 + $0x28] sm:$0xff] %vm918_vm3, %v875_v51  ;;  %v1204_v54 = vadd.f32 %v1203_v53, %v1202_v52  ;;  %v1205_v55 = vpop.f32.mrb[14].mxu0  ;;  %v1272_v59 = vpop.f32.mrb[12].mxu1 }
 0x118   :  { %v1206_v56 = vpop.f32.mrb[15].mxu0  ;;  %v903_v60 = vpop.f32.mrb[13].mxu1 }
 0x119   :  { %v783_v57 = vadd.f32 %v1204_v54, %v1549_v11  ;;  %v1207_v58 = vadd.f32 %v1206_v56, %v1205_v55  ;;  %v1273_v63 = vpop.f32.mrb[14].mxu1 }
 0x11a   :  { %v906_v0 = vpop.f32.mrb[15].mxu1 }
 0x11b   :  { %v880_v61 = vadd.f32 %v1264_v31, %v783_v57  ;;  %v786_v62 = vadd.f32 %v1207_v58, %v1549_v11 }
 0x11d   :  { %925 = vst.msk [vmem:[#allocation2 + $0x30] sm:$0xff] %vm918_vm3, %v880_v61  ;;  %v883_v1 = vadd.f32 %v1265_v35, %v786_v62  ;;  %v1208_v2 = vpop.f32.mrb[16].mxu0 }
 0x11e   :  { %v1209_v3 = vpop.f32.mrb[17].mxu0 }
 0x11f   :  { %926 = vst.msk [vmem:[#allocation2 + $0x38] sm:$0xff] %vm918_vm3, %v883_v1  ;;  %v1210_v4 = vadd.f32 %v1209_v3, %v1208_v2  ;;  %v1211_v5 = vpop.f32.mrb[18].mxu0 }
 0x120   :  { %v1212_v6 = vpop.f32.mrb[19].mxu0 }
 0x121   :  { %v1213_v7 = vadd.f32 %v1212_v6, %v1211_v5  ;;  %v791_v8 = vadd.f32 %v1210_v4, %v1549_v11 }
 0x123   :  { %v888_v9 = vadd.f32 %v887_v46, %v791_v8  ;;  %v794_v10 = vadd.f32 %v1213_v7, %v1549_v11 }
 0x125   :  { %927 = vst.msk [vmem:[#allocation2 + $0x40] sm:$0xff] %vm918_vm3, %v888_v9  ;;  %v891_v12 = vadd.f32 %v890_v50, %v794_v10  ;;  %v1214_v13 = vpop.f32.mrb[20].mxu0 }
 0x126   :  { %v1215_v14 = vpop.f32.mrb[21].mxu0 }
 0x127   :  { %928 = vst.msk [vmem:[#allocation2 + $0x48] sm:$0xff] %vm918_vm3, %v891_v12  ;;  %v1216_v15 = vadd.f32 %v1215_v14, %v1214_v13  ;;  %v1217_v16 = vpop.f32.mrb[22].mxu0 }
 0x128   :  { %v1218_v17 = vpop.f32.mrb[23].mxu0 }
 0x129   :  { %v799_v18 = vadd.f32 %v1216_v15, %v1549_v11  ;;  %v1219_v19 = vadd.f32 %v1218_v17, %v1217_v16 }
 0x12b   :  { %v896_v20 = vadd.f32 %v1268_v45, %v799_v18  ;;  %v802_v21 = vadd.f32 %v1219_v19, %v1549_v11 }
 0x12d   :  { %929 = vst.msk [vmem:[#allocation2 + $0x50] sm:$0xff] %vm918_vm3, %v896_v20  ;;  %v899_v22 = vadd.f32 %v1269_v49, %v802_v21  ;;  %v1220_v23 = vpop.f32.mrb[24].mxu0 }
 0x12e   :  { %v1221_v24 = vpop.f32.mrb[25].mxu0 }
 0x12f   :  { %930 = vst.msk [vmem:[#allocation2 + $0x58] sm:$0xff] %vm918_vm3, %v899_v22  ;;  %v1222_v25 = vadd.f32 %v1221_v24, %v1220_v23  ;;  %v1223_v26 = vpop.f32.mrb[26].mxu0 }
 0x130   :  { %v1224_v27 = vpop.f32.mrb[27].mxu0 }
 0x131   :  { %v1225_v28 = vadd.f32 %v1224_v27, %v1223_v26  ;;  %v807_v29 = vadd.f32 %v1222_v25, %v1549_v11 }
 0x133   :  { %v904_v30 = vadd.f32 %v903_v60, %v807_v29  ;;  %v810_v31 = vadd.f32 %v1225_v28, %v1549_v11 }
 0x135   :  { %931 = vst.msk [vmem:[#allocation2 + $0x60] sm:$0xff] %vm918_vm3, %v904_v30  ;;  %v907_v32 = vadd.f32 %v906_v0, %v810_v31  ;;  %v1226_v33 = vpop.f32.mrb[28].mxu0 }
 0x136   :  { %v1227_v34 = vpop.f32.mrb[29].mxu0 }
 0x137   :  { %932 = vst.msk [vmem:[#allocation2 + $0x68] sm:$0xff] %vm918_vm3, %v907_v32  ;;  %v1228_v35 = vadd.f32 %v1227_v34, %v1226_v33  ;;  %v1229_v36 = vpop.f32.mrb[30].mxu0 }
 0x138   :  { %v1230_v37 = vpop.f32.mrb[31].mxu0 }
 0x139   :  { %v815_v38 = vadd.f32 %v1228_v35, %v1549_v11  ;;  %v1231_v39 = vadd.f32 %v1230_v37, %v1229_v36 }
 0x13b   :  { %v912_v40 = vadd.f32 %v1272_v59, %v815_v38  ;;  %v818_v41 = vadd.f32 %v1231_v39, %v1549_v11 }
 0x13d   :  { %933 = vst.msk [vmem:[#allocation2 + $0x70] sm:$0xff] %vm918_vm3, %v912_v40  ;;  %v915_v42 = vadd.f32 %v1273_v63, %v818_v41 }
 0x13f   :  { %934 = vst.msk [vmem:[#allocation2 + $0x78] sm:$0xff] %vm918_vm3, %v915_v42 }
 0x140   :  { %1363 = shalt.err (!%p1360_p4)
}
 0x141   :  { %s1364_s26 = scalar_lea.hbm %s1598_s3, 2048 }
 0x142   :  { %p1365_p5 = scmp.ne.s32.totalorder %s1598_s3, %s1364_s26  ;;  %p1368_p6 = scmp.lt.u32.totalorder %s1364_s26, %s1598_s3 }
 0x144   :  { %p1370_p7 = pnand %p1368_p6, %p1365_p5 }
 0x146   :  { %1373 = shalt.err (!%p1370_p7)
}
 0x147   :  { %s1378_s4 = smov 128   ;;  %s1379_s5 = smov 8  }
 0x148   :  { %946 = dma.vmem_to_hbm [thread:$0]  %s941_s2, 2048, %s1598_s3, [#allocation3], %s1378_s4, %s1378_s4, %s1379_s5  }
 0x149   :  { %1374 = dma.done.wait [#allocation3], 2048  }
 0x14a   :  { %1375 = vsyncadd [#allocation3], 4294965248 }
 0x14b   :  { %950 = vsyncpa [#allocation3], 1 }

</bundles_post_ra>
